<compile_context>
chip_gen: v5e
topology: v5e:2x2
jax: 0.10.0
libtpu: 0.0.40
codegen_flags: <defaults>
</compile_context>

<pallas_src>
import functools

import jax
import jax.numpy as jnp
from jax import lax
from jax.experimental import pallas as pl
from jax.experimental.pallas import tpu as pltpu


def _expand_kernel(x_ref, o_ref, *, s, c_out, compute_dtype, precision):
    """x_ref: (1, c, th, w)  ->  o_ref: (1, c_out, th, s*s*w).

    Output flat column f = s1*(s*w) + k*s + s2 holds input column k of channel
    group (s1, s2); the (t, s1) row split is a free reshape in the wrapper.
    """
    _, _, th, w = x_ref.shape
    sw = s * w

    # One-hot scatter patterns (source column k -> slab column k*s + s2), one
    # (w, s*w) pattern per s2, built ONCE per grid step (hoisted out of loops).
    k_ids = lax.broadcasted_iota(jnp.int32, (w, sw), 0)
    j_ids = lax.broadcasted_iota(jnp.int32, (w, sw), 1)
    scats = [(j_ids == k_ids * s + s2).astype(compute_dtype) for s2 in range(s)]

    for s1 in range(s):                      # static unroll: s is tiny (default 2)
        slab = None
        for s2 in range(s):
            ch0 = (s1 * s + s2) * c_out
            piece = x_ref[0, ch0:ch0 + c_out, :, :].reshape(c_out * th, w)
            part = jnp.dot(piece.astype(compute_dtype), scats[s2],
                           preferred_element_type=jnp.float32,
                           precision=precision)
            # s2 terms land in disjoint lanes of the slab -> the sum is exact.
            slab = part if slab is None else slab + part
        # Write the s1 slab straight into its contiguous lane slice (no
        # full-width accumulator kept live across slabs).
        o_ref[0, :, :, s1 * sw:(s1 + 1) * sw] = (
            slab.reshape(c_out, th, sw).astype(o_ref.dtype))


def _pick_th(h, row_bytes, batch):
    """h-tile size: a divisor of h (multiple of 8 preferred), sized by bytes.

    Soft target ~2 MiB per input block (amortizes ~0.35 us/step overhead and
    keeps 2x(in)+2x(out) comfortably under a 32 MiB VMEM budget even on 64 MiB
    v7x); hard cap so a fallback block can't blow VMEM; then shrink toward
    >=4 grid steps for multi-TensorCore sharding while blocks stay >=256 KiB.
    """
    soft_bytes = 2 * 1024 * 1024
    hard_bytes = 4 * 1024 * 1024
    divs = [d for d in range(1, h + 1) if h % d == 0]
    pref = [d for d in divs if d % 8 == 0] or divs   # guard: h not divisible by 8
    fitting = [d for d in pref if d * row_bytes <= soft_bytes]
    th = max(fitting) if fitting else min(pref)
    # Never let one block blow VMEM (guards the min(pref)/full-h fallback).
    while th * row_bytes > hard_bytes:
        smaller = [d for d in divs if d < th]
        if not smaller:
            break
        th = max(smaller)
    # Multi-TC megacore: prefer >=4 parallel grid steps while blocks stay big.
    def steps(t):
        return batch * (h // t)
    while steps(th) < 4:
        smaller = [d for d in pref if d < th]
        if not smaller:
            break
        cand = max(smaller)
        if steps(th) >= 2 and cand * row_bytes < 256 * 1024:
            break
        th = cand
    return th


@functools.partial(jax.jit, static_argnames=("gain",))
def expand_pallas(x, gain=2):
    b, c, h, w = x.shape
    s = int(gain)
    assert s >= 1 and c % (s * s) == 0, "channels must be divisible by gain**2"
    c_out = c // (s * s)

    if x.dtype == jnp.bfloat16:
        # Single MXU pass; exact for 0/1 weights with f32 accumulation.
        compute_dtype, precision = jnp.bfloat16, lax.Precision.DEFAULT
    else:
        # Exact for f32; integer inputs are exact for |x| < 2**24.
        compute_dtype, precision = jnp.float32, lax.Precision.HIGHEST

    th = _pick_th(h, c * w * x.dtype.itemsize, b)
    grid = (b, h // th)

    out_flat = pl.pallas_call(
        functools.partial(_expand_kernel, s=s, c_out=c_out,
                          compute_dtype=compute_dtype, precision=precision),
        out_shape=jax.ShapeDtypeStruct((b, c_out, h, s * s * w), x.dtype),
        grid=grid,
        in_specs=[pl.BlockSpec((1, c, th, w), lambda bi, hi: (bi, 0, hi, 0))],
        # Lane-dense output block: last dim is the full s*s*w extent.
        out_specs=pl.BlockSpec((1, c_out, th, s * s * w),
                               lambda bi, hi: (bi, 0, hi, 0)),
        compiler_params=pltpu.CompilerParams(
            dimension_semantics=("parallel", "parallel"),
            vmem_limit_bytes=32 * 1024 * 1024),
    )(x)
    # Free row-major reinterpretation:
    # (b, c_out, h, (s1, k, s2)) -> (b, c_out, h*s, w*s)
    return out_flat.reshape(b, c_out, h * s, w * s)


class ExpandPallas:
    """Pallas equivalent of models.common.Expand(gain)."""

    def __init__(self, gain=2):
        self.gain = gain

    def __call__(self, x):
        return expand_pallas(x, gain=self.gain)

    forward = __call__


def _expand_ref(x, gain=2):
    """Pure-JAX reference mirroring the PyTorch module."""
    b, c, h, w = x.shape
    s = gain
    x = x.reshape(b, s, s, c // (s * s), h, w)
    x = jnp.transpose(x, (0, 3, 4, 1, 5, 2))
    return x.reshape(b, c // (s * s), h * s, w * s)


if __name__ == "__main__":
    key = jax.random.PRNGKey(0)
    x = jax.random.uniform(key, (2, 4, 16, 16), jnp.float32)     # (b, c, h, w)
    model = ExpandPallas(gain=2)
    y = jax.block_until_ready(model(x))
    y_ref = _expand_ref(x, gain=2)
    assert y.shape == (2, 1, 32, 32) and y.dtype == x.dtype
    # Pure permutation: f32 @ HIGHEST with 0/1 weights is exact, so the check
    # is tight — any wrong permutation would show up as an O(1) error.
    err = float(jnp.max(jnp.abs(y - y_ref)))
    assert err <= 1e-6, err
    print("KERNEL_OK")
</pallas_src>

<mosaic_0001>
module attributes {stable_mosaic.version = 11 : i64} {
  func.func @_expand_kernel(%arg0: i32, %arg1: i32, %arg2: memref<1x4x16x16xf32, #tpu.memory_space<vmem>>, %arg3: memref<1x1x16x64xf32, #tpu.memory_space<vmem>>) attributes {dimension_semantics = [#tpu.dimension_semantics<parallel>, #tpu.dimension_semantics<parallel>], iteration_bounds = array<i64: 2, 1>, scalar_prefetch = 0 : i64, scratch_operands = 0 : i64, tpu.core_type = #tpu.core_type<tc>, window_params = [{transform_indices = @transform_0, window_bounds = array<i64: 1, 4, 16, 16>}, {transform_indices = @transform_1, window_bounds = array<i64: 1, 1, 16, 64>}]} {
    %0 = tpu.iota {dimensions = array<i32: 0>} : vector<16x32xi32>
    %1 = tpu.iota {dimensions = array<i32: 1>} : vector<16x32xi32>
    %c2_i32 = arith.constant 2 : i32
    %2 = vector.broadcast %c2_i32 : i32 to vector<16x32xi32>
    %3 = arith.muli %0, %2 : vector<16x32xi32>
    %c0_i32 = arith.constant 0 : i32
    %4 = vector.broadcast %c0_i32 : i32 to vector<16x32xi32>
    %5 = arith.addi %3, %4 : vector<16x32xi32>
    %6 = arith.cmpi eq, %1, %5 : vector<16x32xi32>
    %7 = arith.extui %6 : vector<16x32xi1> to vector<16x32xi32>
    %8 = arith.sitofp %7 : vector<16x32xi32> to vector<16x32xf32>
    %c2_i32_0 = arith.constant 2 : i32
    %9 = vector.broadcast %c2_i32_0 : i32 to vector<16x32xi32>
    %10 = arith.muli %0, %9 : vector<16x32xi32>
    %c1_i32 = arith.constant 1 : i32
    %11 = vector.broadcast %c1_i32 : i32 to vector<16x32xi32>
    %12 = arith.addi %10, %11 : vector<16x32xi32>
    %13 = arith.cmpi eq, %1, %12 : vector<16x32xi32>
    %14 = arith.extui %13 : vector<16x32xi1> to vector<16x32xi32>
    %15 = arith.sitofp %14 : vector<16x32xi32> to vector<16x32xf32>
    %c0 = arith.constant 0 : index
    %c0_1 = arith.constant 0 : index
    %c0_2 = arith.constant 0 : index
    %c0_3 = arith.constant 0 : index
    %16 = vector.load %arg2[%c0, %c0_1, %c0_2, %c0_3] : memref<1x4x16x16xf32, #tpu.memory_space<vmem>>, vector<1x1x16x16xf32>
    %17 = vector.shape_cast %16 : vector<1x1x16x16xf32> to vector<1x16x16xf32>
    %18 = vector.shape_cast %17 : vector<1x16x16xf32> to vector<16x16xf32>
    %cst = arith.constant dense<0.000000e+00> : vector<16x32xf32>
    %19 = tpu.matmul %18, %8, %cst {dimension_numbers = #tpu.dot_dimension_numbers<[1], [0], [0], [1], [0, 0, 1, 1], [], []>, precision = #tpu.contract_precision<fp32>} : vector<16x16xf32>, vector<16x32xf32>, vector<16x32xf32> -> vector<16x32xf32>
    %c0_4 = arith.constant 0 : index
    %c1 = arith.constant 1 : index
    %c0_5 = arith.constant 0 : index
    %c0_6 = arith.constant 0 : index
    %20 = vector.load %arg2[%c0_4, %c1, %c0_5, %c0_6] : memref<1x4x16x16xf32, #tpu.memory_space<vmem>>, vector<1x1x16x16xf32>
    %21 = vector.shape_cast %20 : vector<1x1x16x16xf32> to vector<1x16x16xf32>
    %22 = vector.shape_cast %21 : vector<1x16x16xf32> to vector<16x16xf32>
    %cst_7 = arith.constant dense<0.000000e+00> : vector<16x32xf32>
    %23 = tpu.matmul %22, %15, %cst_7 {dimension_numbers = #tpu.dot_dimension_numbers<[1], [0], [0], [1], [0, 0, 1, 1], [], []>, precision = #tpu.contract_precision<fp32>} : vector<16x16xf32>, vector<16x32xf32>, vector<16x32xf32> -> vector<16x32xf32>
    %24 = arith.addf %19, %23 : vector<16x32xf32>
    %25 = vector.shape_cast %24 : vector<16x32xf32> to vector<1x16x32xf32>
    %c0_8 = arith.constant 0 : index
    %c0_9 = arith.constant 0 : index
    %c0_10 = arith.constant 0 : index
    %c0_11 = arith.constant 0 : index
    %26 = vector.load %arg3[%c0_8, %c0_9, %c0_10, %c0_11] : memref<1x1x16x64xf32, #tpu.memory_space<vmem>>, vector<1x1x16x32xf32>
    %27 = vector.shape_cast %26 : vector<1x1x16x32xf32> to vector<1x16x32xf32>
    %28 = vector.shape_cast %25 : vector<1x16x32xf32> to vector<1x1x16x32xf32>
    tpu.vector_store %arg3[%c0_8, %c0_9, %c0_10, %c0_11], %28 {strides = array<i32>} : memref<1x1x16x64xf32, #tpu.memory_space<vmem>>, vector<1x1x16x32xf32>,
    %c0_12 = arith.constant 0 : index
    %c2 = arith.constant 2 : index
    %c0_13 = arith.constant 0 : index
    %c0_14 = arith.constant 0 : index
    %29 = vector.load %arg2[%c0_12, %c2, %c0_13, %c0_14] : memref<1x4x16x16xf32, #tpu.memory_space<vmem>>, vector<1x1x16x16xf32>
    %30 = vector.shape_cast %29 : vector<1x1x16x16xf32> to vector<1x16x16xf32>
    %31 = vector.shape_cast %30 : vector<1x16x16xf32> to vector<16x16xf32>
    %cst_15 = arith.constant dense<0.000000e+00> : vector<16x32xf32>
    %32 = tpu.matmul %31, %8, %cst_15 {dimension_numbers = #tpu.dot_dimension_numbers<[1], [0], [0], [1], [0, 0, 1, 1], [], []>, precision = #tpu.contract_precision<fp32>} : vector<16x16xf32>, vector<16x32xf32>, vector<16x32xf32> -> vector<16x32xf32>
    %c0_16 = arith.constant 0 : index
    %c3 = arith.constant 3 : index
    %c0_17 = arith.constant 0 : index
    %c0_18 = arith.constant 0 : index
    %33 = vector.load %arg2[%c0_16, %c3, %c0_17, %c0_18] : memref<1x4x16x16xf32, #tpu.memory_space<vmem>>, vector<1x1x16x16xf32>
    %34 = vector.shape_cast %33 : vector<1x1x16x16xf32> to vector<1x16x16xf32>
    %35 = vector.shape_cast %34 : vector<1x16x16xf32> to vector<16x16xf32>
    %cst_19 = arith.constant dense<0.000000e+00> : vector<16x32xf32>
    %36 = tpu.matmul %35, %15, %cst_19 {dimension_numbers = #tpu.dot_dimension_numbers<[1], [0], [0], [1], [0, 0, 1, 1], [], []>, precision = #tpu.contract_precision<fp32>} : vector<16x16xf32>, vector<16x32xf32>, vector<16x32xf32> -> vector<16x32xf32>
    %37 = arith.addf %32, %36 : vector<16x32xf32>
    %38 = vector.shape_cast %37 : vector<16x32xf32> to vector<1x16x32xf32>
    %c0_20 = arith.constant 0 : index
    %c0_21 = arith.constant 0 : index
    %c0_22 = arith.constant 0 : index
    %c32 = arith.constant 32 : index
    %39 = vector.load %arg3[%c0_20, %c0_21, %c0_22, %c32] : memref<1x1x16x64xf32, #tpu.memory_space<vmem>>, vector<1x1x16x32xf32>
    %40 = vector.shape_cast %39 : vector<1x1x16x32xf32> to vector<1x16x32xf32>
    %41 = vector.shape_cast %38 : vector<1x16x32xf32> to vector<1x1x16x32xf32>
    tpu.vector_store %arg3[%c0_20, %c0_21, %c0_22, %c32], %41 {strides = array<i32>} : memref<1x1x16x64xf32, #tpu.memory_space<vmem>>, vector<1x1x16x32xf32>,
    return
  }
  func.func @transform_0(%arg0: i32, %arg1: i32) -> (i32, i32, i32, i32) {
    %c0_i32 = arith.constant 0 : i32
    %c0_i32_0 = arith.constant 0 : i32
    %c0_i32_1 = arith.constant 0 : i32
    return %arg0, %c0_i32, %arg1, %c0_i32_0 : i32, i32, i32, i32
  }
  func.func @transform_1(%arg0: i32, %arg1: i32) -> (i32, i32, i32, i32) {
    %c0_i32 = arith.constant 0 : i32
    %c0_i32_0 = arith.constant 0 : i32
    %c0_i32_1 = arith.constant 0 : i32
    return %arg0, %c0_i32, %arg1, %c0_i32_0 : i32, i32, i32, i32
  }
}

</mosaic_0001>

<bundles_post_ra>
// kernel: expand_pallas.1
= control target key start
LH: loop header
LB: loop body
LE: loop exit
PB: predicated region body
PF: predicated region fallthrough
CT: control target
= control target key end

     0   :  { %6 = vsyncpa [#allocation3], 0  ;;  %s1574_s0 = inlined_call_operand.hbm [shape: f32[2,4,16,16], index: 0, kind: input, shape index: {}]   ;;  %s1575_s1 = inlined_call_operand.vmem [shape: f32[2,1,16,64], index: 1, kind: output, shape index: {}]  }
   0x1   :  { %8 = vsyncpa [#allocation3 + $0x1], 0  ;;  %s1299_s6 = smov 0   ;;  %s1301_s7 = smov 0  }
   0x2   :  { %s1303_s8 = smov 0   ;;  %s1305_s9 = smov 0  }
   0x3   :  { %s1307_s10 = smov 0   ;;  %s1309_s11 = smov 0  }
   0x4 LB: > { %s1093_s12 = sadd.s32 4294967295, %s1282_s11   ;;  %s26_s13 = sadd.s32 1, %s1278_s10  ;;  %s1282_s11 = sphi %s1309_s11, %s14_s11   ;;  %s1278_s10 = sphi %s1307_s10, %s1590_s10   ;;  %s1274_s9 = sphi %s1305_s9, %s1589_s9   ;;  %s1270_s8 = sphi %s1303_s8, %s1588_s8   ;;  %s1266_s7 = sphi %s1301_s7, %s1587_s7   ;;  %s1262_s6 = sphi %s1299_s6, %s1586_s6  }
   0x5   : > { %p28_p0 = scmp.ge.s32.totalorder %s26_s13, 2  ;;  %s35_s14 = sadd.s32 1, %s1270_s8 }
   0x6   : > { %p42_p1 = scmp.ne.s32.totalorder %s1270_s8, %s1266_s7  ;;  %p43_p2 = scmp.eq.s32.totalorder %s1282_s11, 0 }
   0x7   : > { %s1592_s13 = smov (%p28_p0, %s26_s13), 0  ;;  %p48_p4 = scmp.ne.s32.totalorder %s1266_s7, %s1262_s6 }
   0x8   : > { %p1335_p3 = por %p43_p2, %p42_p1  ;;  %s30_s16 = ssub.s32 %s1278_s10, %s1592_s13 }
   0x9   : > { %p49_p5 = scmp.eq.s32.totalorder %s1093_s12, 0  ;;  %p33_p6 = scmp.eq.s32.totalorder %s30_s16, 0 }
   0xa   : > { %p1148_p8 = scmp.lt.s32.totalorder %s1282_s11, 2  ;;  %s100_s19 = sand.u32 1, %s1270_s8  }
   0xb   : > { %p1342_p7 = por %p49_p5, %p48_p4  ;;  %s1140_s20 = sshll.u32 %s1278_s10, 6 }
   0xc   : > { %s1348_s18 = scalar_select %p33_p6, %s1270_s8, %s35_s14  }
   0xd   : > { %s1097_s21 = sshll.u32 %s100_s19, 6  ;;  %s111_s24 = scalar_lea.hbm %s1574_s0, %s1140_s20 }
   0xe   : > { %s112_s25 = sshll.u32 %s111_s24, 4  ;;  %s104_s26 = scalar_lea.vmem [#allocation2], %s1097_s21  ;;  %s113_s25 = int_to_ptr.hbm [resolvable:$true] %s112_s25 }
   0xf   : > { %s114_s27 = sshll.u32 %s104_s26, 4  ;;  %p1145_p9 = pnand %p1148_p8, %p1335_p3  ;;  %s115_s27 = int_to_ptr.vmem [resolvable:$true] %s114_s27 }
  0x10   : > { %p1100_p10 = scmp.ge.s32.totalorder %s1282_s11, 1  ;;  %p122_p11 = scmp.lt.s32.totalorder %s1282_s11, 3 }
  0x11   : > { %s101_s28 = scalar_lea.sflag [#allocation3], %s100_s19  ;;  %s1284_s29 = smov 128  }
  0x12   : > { %s1285_s30 = smov 8   ;;  %p123_p12 = pnand %p1100_p10, %p122_p11 }
  0x13   : > { %1147 = dma.hbm_to_vmem [thread:$0]  (!%p1145_p9), %s113_s25, 1024, %s115_s27, %s101_s28, %s1284_s29, %s1284_s29, %s1285_s30  }
  0x14   : > { %126 = sbr.rel (%p123_p12) target bundleno = 385 (0x181), region = 24  ;;  %s128_s2 = sand.u32 (!%p123_p12), 1, %s1266_s7  }
  0x15   : > { %s1101_s3 = sshll.u32 (!%p123_p12), %s128_s2, 6  ;;  %s129_s4 = scalar_lea.sflag (!%p123_p12), [#allocation3], %s128_s2 }
  0x16   : > { %s1360_s5 = scalar_lea.vmem (!%p123_p12), [#allocation2], %s1101_s3 }
  0x19   : > { %1257 = dma.done.wait (%p1342_p7), %s129_s4, 1024  }
  0x1a   : > { %1259 = vsyncadd (%p1342_p7), %s129_s4, 4294966272  ;;  %v167_v0 = vlaneseq  ;;  %vm193_vm0 = vcmask 130048   ;;  %v1108_v8 = vld [vmem:[%s1360_s5 + $0x10] sm:$0xff]  ;;  %v1109_v9 = vld [vmem:[%s1360_s5 + $0x18] sm:$0xff]  ;;  %v1286_v10 = vmov 0.0   ;;  %v1287_v25 = vmov 1.0  }
  0x1b   : > { %v195_v14 = vsel %vm193_vm0, %v1108_v8, 0  ;;  %v188_v16 = vld [vmem:[%s1360_s5] sm:$0xff]  ;;  %v198_v20 = vsel %vm193_vm0, %v1109_v9, 0  ;;  %v189_v43 = vld [vmem:[%s1360_s5 + $0x8] sm:$0xff]  ;;  %v1124_v62 = vld [vmem:[%s1360_s5 + $0x30] sm:$0xff]  ;;  %p158_p13 = scmp.lt.s32.totalorder %s1274_s9, 1 }
  0x1c   : > { %v168_v1 = vshrl.u32 %v167_v0, 7  ;;  %v171_v3 = vand.u32 127, %v167_v0  ;;  %v1386_v18 = vand.u32 4294901760, %v195_v14  ;;  %v1399_v24 = vand.u32 4294901760, %v198_v20 }
  0x1d   : > { %v391_v29 = vsel %vm193_vm0, %v188_v16, 0  ;;  %v394_v51 = vsel %vm193_vm0, %v189_v43, 0  ;;  %v596_v63 = vsel %vm193_vm0, %v1124_v62, 0  ;;  %v1123_v16 = vld [vmem:[%s1360_s5 + $0x28] sm:$0xff]  ;;  %s1594_s9 = smov (!%p158_p13, %s1274_s9), 1  ;;  %vm586_vm5 = vcmask 261120  }
  0x1e   : > { %v169_v2 = vadd.s32 8, %v168_v1  ;;  %v172_v4 = vmul.u32 2, %v168_v1  ;;  %v219_v27 = vsub.f32 %v195_v14, %v1386_v18  ;;  %v227_v33 = vsub.f32 %v198_v20, %v1399_v24  ;;  %v1125_v1 = vld [vmem:[%s1360_s5 + $0x38] sm:$0xff]  ;;  %s1141_s6 = sshll.u32 %s1594_s9, 4  ;;  %s1288_s9 = smov 32  }
  0x1f   : > { %v1431_v36 = vand.u32 4294901760, %v391_v29  ;;  %v422_v54 = vand.u32 4294901760, %v394_v51  ;;  %v619_v0 = vand.u32 4294901760, %v596_v63  ;;  %v795_v13 = vsel %vm193_vm0, %v1123_v16, 0  ;;  %s1550_s15 = scalar_lea.vmem %s1575_s1, %s1141_s6 }
  0x20   : > { %v173_v5 = vmul.u32 2, %v169_v2  ;;  %v180_v6 = vadd.s32 1, %v172_v4  ;;  %vm1366_vm1 = vcmp.eq.s32.totalorder %v171_v3, %v172_v4  ;;  %v220_v34 = vand.u32 4294901760, %v219_v27 }
  0x21   : > { %v1104_v11 = vsel %vm1366_vm1, 1.0, %v1286_v10  ;;  %v228_v41 = vand.u32 4294901760, %v227_v33  ;;  %v1449_v48 = vsub.f32 %v391_v29, %v1431_v36  ;;  %v423_v57 = vsub.f32 %v394_v51, %v422_v54 }
  0x22   : > { %v181_v12 = vadd.s32 1, %v173_v5  ;;  %vm1374_vm2 = vcmp.eq.s32.totalorder %v171_v3, %v180_v6  ;;  %vm1379_vm3 = vcmp.eq.s32.totalorder %v171_v3, %v173_v5  ;;  %v1410_v28 = vsub.f32 %v1104_v11, %v1104_v11  ;;  %v1122_v6 = vld [vmem:[%s1360_s5 + $0x20] sm:$0xff] }
  0x23   : > { %v1106_v17 = vsel %vm1374_vm2, 1.0, %v1286_v10  ;;  %v1105_v19 = vsel %vm1379_vm3, 1.0, %v1286_v10  ;;  %v221_v40 = vsub.f32 %v219_v27, %v220_v34  ;;  %v229_v52 = vsub.f32 %v227_v33, %v228_v41 }
  0x24   : > { %vm1391_vm4 = vcmp.eq.s32.totalorder %v171_v3, %v181_v12  ;;  %v1395_v22 = vsub.f32 %v1106_v17, %v1106_v17  ;;  %v1397_v23 = vsub.f32 %v1105_v19, %v1105_v19  ;;  %v1429_v35 = vand.u32 4294901760, %v1410_v28 }
  0x25   : > { %1110 = vmatpush.msk.msra.mxu0 %vm1391_vm4, %v1287_v25  ;;  %v1107_v26 = vsel %vm1391_vm4, 1.0, %v1286_v10  ;;  %1112 = vmatpush.msk.msra.mxu3 %vm1391_vm4, %v1287_v25  ;;  %v222_v46 = vand.u32 4294901760, %v221_v40  ;;  %v416_v53 = vand.u32 4294901760, %v1449_v48  ;;  %v230_v55 = vand.u32 4294901760, %v229_v52 }
  0x26   : > { %v1413_v30 = vsub.f32 %v1107_v26, %v1107_v26  ;;  %v1416_v31 = vand.u32 4294901760, %v1397_v23  ;;  %v1419_v32 = vand.u32 4294901760, %v1395_v22  ;;  %v454_v42 = vsub.f32 %v1410_v28, %v1429_v35 }
  0x27   : > { %1111 = vmatpush.msk.msra.mxu0 %vm1374_vm2, %v1287_v25  ;;  %1113 = vmatpush.msk.msra.mxu3 %vm1374_vm2, %v1287_v25  ;;  %v417_v56 = vsub.f32 %v1449_v48, %v416_v53  ;;  %v424_v59 = vand.u32 4294901760, %v423_v57  ;;  %v620_v2 = vsub.f32 %v596_v63, %v619_v0  ;;  %v599_v3 = vsel %vm193_vm0, %v1125_v1, 0 }
  0x28   : > { %286 = vmatpush.msra.mxu2 %v1413_v30  ;;  %v1435_v37 = vand.u32 4294901760, %v1413_v30  ;;  %v448_v38 = vsub.f32 %v1397_v23, %v1416_v31  ;;  %v258_v39 = vsub.f32 %v1395_v22, %v1419_v32  ;;  %322 = vmatmul.f32.vlgmr.msra.gmra.mxu3 %v220_v34  ;;  %v455_v47 = vand.u32 4294901760, %v454_v42 }
  0x29   : > { %223 = vmatmul.f32.vlgmr.msra.gmra.mxu0 %v222_v46  ;;  %v418_v58 = vand.u32 4294901760, %v417_v56  ;;  %v425_v60 = vsub.f32 %v423_v57, %v424_v59  ;;  %v621_v4 = vand.u32 4294901760, %v620_v2  ;;  %v627_v5 = vand.u32 4294901760, %v599_v3 }
  0x2a   : > { %289 = vmatpush.msra.mxu2 %v1395_v22  ;;  %v252_v44 = vsub.f32 %v1413_v30, %v1435_v37  ;;  %349 = vmatpush.msrb.mxu0 %v1435_v37  ;;  %v449_v45 = vand.u32 4294901760, %v448_v38  ;;  %v259_v50 = vand.u32 4294901760, %v258_v39  ;;  %v792_v8 = vsel %vm193_vm0, %v1122_v6, 0 }
  0x2b   : > { %292 = vmatmul.f32.vlgmr.msra.gmra.mxu2 %v219_v27  ;;  %v426_v61 = vand.u32 4294901760, %v425_v60  ;;  %v622_v9 = vsub.f32 %v620_v2, %v621_v4  ;;  %v628_v10 = vsub.f32 %v599_v3, %v627_v5  ;;  %v815_v11 = vand.u32 4294901760, %v792_v8 }
  0x2c   : > { %1116 = vmatpush.msk.msrb.mxu2 %vm1379_vm3, %v1287_v25  ;;  %v253_v49 = vand.u32 4294901760, %v252_v44  ;;  %450 = vmatpush.msrb.mxu3 %v449_v45  ;;  %v823_v20 = vand.u32 4294901760, %v795_v13  ;;  %vm995_vm6 = vcmask 523520  }
  0x2d   : > { %353 = vmatpush.msrb.mxu0 %v1419_v32  ;;  %v623_v12 = vand.u32 4294901760, %v622_v9  ;;  %v629_v14 = vand.u32 4294901760, %v628_v10  ;;  %v816_v17 = vsub.f32 %v792_v8, %v815_v11 }
  0x2e   : > { %254 = vmatpush.msra.mxu1 %v253_v49  ;;  %1117 = vmatpush.msk.msrb.mxu2 %vm1366_vm1, %v1287_v25 }
  0x2f   : > { %456 = vmatpush.msrb.mxu3 %v455_v47  ;;  %482 = vmatpush.msra.mxu0 %v1397_v23  ;;  %v817_v19 = vand.u32 4294901760, %v816_v17 }
  0x30   : > { %260 = vmatpush.msra.mxu1 %v259_v50  ;;  %545 = vmatpush.msra.mxu2 %v1416_v31 }
  0x31   : > { %262 = vmatmul.f32.vlgmr.msra.gmra.mxu1 %v1386_v18  ;;  %328 = vmatmul.f32.gmra.mxu3 %v228_v41 }
  0x32   : > { %1114 = vmatpush.msk.msrb.mxu1 %vm1391_vm4, %v1287_v25  ;;  %1120 = vmatpush.msk.msra.mxu3 %vm1379_vm3, %v1287_v25 }
  0x33   : > { %297 = vmatmul.f32.gmra.mxu2 %v227_v33  ;;  %231 = vmatmul.f32.gmra.mxu0 %v230_v55 }
  0x34   : > { %1115 = vmatpush.msk.msrb.mxu1 %vm1374_vm2, %v1287_v25  ;;  %549 = vmatpush.msra.mxu2 %v1429_v35 }
  0x35   : > { %485 = vmatpush.msra.mxu0 %v1410_v28  ;;  %1121 = vmatpush.msk.msra.mxu3 %vm1366_vm1, %v1287_v25 }
  0x36   : > { %1118 = vmatpush.msk.msra.mxu1 %vm1379_vm3, %v1287_v25 }
  0x38   : > { %1119 = vmatpush.msk.msra.mxu1 %vm1366_vm1, %v1287_v25 }
  0x39   : > { %266 = vmatmul.f32.gmra.mxu1 %v1399_v24  ;;  %458 = vmatmul.f32.vlgmr.msrb.gmra.mxu3 %v1431_v36 }
  0x3a   : > { %1128 = vmatpush.msk.msrb.mxu3 %vm1391_vm4, %v1287_v25 }
  0x3b   : > { %419 = vmatmul.f32.vlgmr.msrb.gmra.mxu2 %v418_v58  ;;  %355 = vmatmul.f32.vlgmr.msrb.gmra.mxu0 %v1386_v18 }
  0x3c   : > { %687 = vmatpush.msrb.mxu2 %v1413_v30  ;;  %1129 = vmatpush.msk.msrb.mxu3 %vm1374_vm2, %v1287_v25 }
  0x3d   : > { %1126 = vmatpush.msk.msrb.mxu0 %vm1391_vm4, %v1287_v25 }
  0x3e   : > { %690 = vmatpush.msrb.mxu2 %v1395_v22  ;;  %v818_v22 = vsub.f32 %v816_v17, %v817_v19 }
  0x3f   : > { %1127 = vmatpush.msk.msrb.mxu0 %vm1374_vm2, %v1287_v25 }
  0x41   : > { %382 = vmatmul.f32.vlgmr.msrb.gmra.mxu1 %v1386_v18  ;;  %462 = vmatmul.f32.gmra.mxu3 %v422_v54  ;;  %v630_v18 = vsub.f32 %v628_v10, %v629_v14 }
  0x42   : > { %655 = vmatpush.msrb.mxu1 %v253_v49 }
  0x43   : > { %427 = vmatmul.f32.gmra.mxu2 %v426_v61  ;;  %359 = vmatmul.f32.gmra.mxu0 %v1399_v24  ;;  %v631_v21 = vand.u32 4294901760, %v630_v18 }
  0x44   : > { %661 = vmatpush.msrb.mxu1 %v259_v50 }
  0x49   : > { %386 = vmatmul.f32.gmra.mxu1 %v1399_v24  ;;  %578 = vmatmul.f32.vlgmr.msra.gmra.mxu3 %v1431_v36  ;;  %v824_v24 = vsub.f32 %v795_v13, %v823_v20 }
  0x4a   : > { %851 = vmatpush.msra.mxu3 %v449_v45 }
  0x4b   : > { %551 = vmatmul.f32.vlgmr.msra.gmra.mxu2 %v1431_v36  ;;  %488 = vmatmul.f32.vlgmr.msra.gmra.mxu0 %v1449_v48  ;;  %v825_v26 = vand.u32 4294901760, %v824_v24 }
  0x4c   : > { %1132 = vmatpush.msk.msra.mxu2 %vm1379_vm3, %v1287_v25  ;;  %857 = vmatpush.msra.mxu3 %v455_v47 }
  0x4d   : > { %750 = vmatpush.msra.mxu0 %v1435_v37  ;;  %v826_v27 = vsub.f32 %v824_v24, %v825_v26 }
  0x4e   : > { %1133 = vmatpush.msk.msra.mxu2 %vm1366_vm1, %v1287_v25 }
  0x4f   : > { %754 = vmatpush.msra.mxu0 %v1419_v32 }
  0x51   : > { %518 = vmatmul.f32.vlgmr.msra.gmra.mxu1 %v416_v53  ;;  %582 = vmatmul.f32.gmra.mxu3 %v422_v54 }
  0x52   : > { %1130 = vmatpush.msk.msra.mxu1 %vm1391_vm4, %v1287_v25 }
  0x53   : > { %555 = vmatmul.f32.gmra.mxu2 %v422_v54  ;;  %493 = vmatmul.f32.gmra.mxu0 %v423_v57 }
  0x54   : > { %1131 = vmatpush.msk.msra.mxu1 %vm1374_vm2, %v1287_v25 }
  0x59   : > { %524 = vmatmul.f32.gmra.mxu1 %v424_v59  ;;  %723 = vmatmul.f32.vlgmr.msrb.gmra.mxu3 %v621_v4 }
  0x5a   : > { %1136 = vmatpush.msk.msrb.mxu3 %vm1379_vm3, %v1287_v25 }
  0x5b   : > { %693 = vmatmul.f32.vlgmr.msrb.gmra.mxu2 %v620_v2  ;;  %624 = vmatmul.f32.vlgmr.msrb.gmra.mxu0 %v623_v12 }
  0x5c   : > { %946 = vmatpush.msrb.mxu2 %v1416_v31  ;;  %1137 = vmatpush.msk.msrb.mxu3 %vm1366_vm1, %v1287_v25 }
  0x5d   : > { %883 = vmatpush.msrb.mxu0 %v1397_v23  ;;  %v819_v23 = vand.u32 4294901760, %v818_v22 }
  0x5e   : > { %950 = vmatpush.msrb.mxu2 %v1429_v35 }
  0x5f   : > { %886 = vmatpush.msrb.mxu0 %v1410_v28  ;;  %v827_v28 = vand.u32 4294901760, %v826_v27 }
  0x61   : > { %663 = vmatmul.f32.vlgmr.msrb.gmra.mxu1 %v619_v0  ;;  %729 = vmatmul.f32.gmra.mxu3 %v629_v14 }
  0x62   : > { %1134 = vmatpush.msk.msrb.mxu1 %vm1379_vm3, %v1287_v25 }
  0x63   : > { %698 = vmatmul.f32.gmra.mxu2 %v628_v10  ;;  %632 = vmatmul.f32.gmra.mxu0 %v631_v21 }
  0x64   : > { %1135 = vmatpush.msk.msrb.mxu1 %vm1366_vm1, %v1287_v25 }
  0x69   : > { %667 = vmatmul.f32.gmra.mxu1 %v627_v5  ;;  %859 = vmatmul.f32.vlgmr.msra.gmra.mxu3 %v815_v11 }
  0x6b   : > { %820 = vmatmul.f32.vlgmr.msra.gmra.mxu2 %v819_v23  ;;  %756 = vmatmul.f32.vlgmr.msra.gmra.mxu0 %v619_v0 }
  0x71   : > { %783 = vmatmul.f32.vlgmr.msra.gmra.mxu1 %v619_v0  ;;  %863 = vmatmul.f32.gmra.mxu3 %v823_v20 }
  0x73   : > { %828 = vmatmul.f32.gmra.mxu2 %v827_v28  ;;  %760 = vmatmul.f32.gmra.mxu0 %v627_v5 }
  0x79   : > { %787 = vmatmul.f32.gmra.mxu1 %v627_v5  ;;  %979 = vmatmul.f32.vlgmr.msrb.gmra.mxu3 %v815_v11 }
  0x7b   : > { %952 = vmatmul.f32.vlgmr.msrb.gmra.mxu2 %v815_v11  ;;  %889 = vmatmul.f32.vlgmr.msrb.gmra.mxu0 %v816_v17 }
  0x81   : > { %919 = vmatmul.f32.vlgmr.msrb.gmra.mxu1 %v817_v19  ;;  %983 = vmatmul.f32.gmra.mxu3 %v823_v20 }
  0x83   : > { %956 = vmatmul.f32.gmra.mxu2 %v823_v20  ;;  %894 = vmatmul.f32.gmra.mxu0 %v824_v24 }
  0x89   : > { %925 = vmatmul.f32.gmra.mxu1 %v825_v26 }
  0xa6   : > { %v224_v7 = vpop.f32.mrf.mxu0 }
  0xab   : > { %v323_v15 = vpop.f32.mrf.mxu3 }
  0xae   : > { %v263_v25 = vpop.f32.mrf.mxu1  ;;  %v293_v29 = vpop.f32.mrf.mxu2 }
  0xaf   : > { %v264_v34 = vadd.f32 %v263_v25, %v224_v7 }
  0xb0   : > { %v232_v30 = vpop.f32.mrf.mxu0 }
  0xb1   : > { %v294_v36 = vadd.f32 %v293_v29, %v264_v34 }
  0xb3   : > { %v324_v40 = vadd.f32 %v323_v15, %v294_v36 }
  0xb4   : > { %v329_v31 = vpop.f32.mrf.mxu3 }
  0xb6   : > { %v267_v32 = vpop.f32.mrf.mxu1  ;;  %v298_v33 = vpop.f32.mrf.mxu2 }
  0xb7   : > { %v268_v41 = vadd.f32 %v267_v32, %v232_v30 }
  0xb8   : > { %v356_v35 = vpop.f32.mrf.mxu0 }
  0xb9   : > { %v357_v42 = vadd.f32 %v356_v35, %v324_v40  ;;  %v299_v44 = vadd.f32 %v298_v33, %v268_v41 }
  0xbb   : > { %v330_v49 = vadd.f32 %v329_v31, %v299_v44 }
  0xbc   : > { %v459_v37 = vpop.f32.mrf.mxu3 }
  0xbe   : > { %v383_v38 = vpop.f32.mrf.mxu1  ;;  %v420_v39 = vpop.f32.mrf.mxu2 }
  0xbf   : > { %v384_v45 = vadd.f32 %v383_v38, %v357_v42 }
  0xc0   : > { %v360_v43 = vpop.f32.mrf.mxu0 }
  0xc1   : > { %v421_v50 = vadd.f32 %v420_v39, %v384_v45  ;;  %v361_v51 = vadd.f32 %v360_v43, %v330_v49 }
  0xc3   : > { %v460_v53 = vadd.f32 %v459_v37, %v421_v50 }
  0xc4   : > { %v463_v46 = vpop.f32.mrf.mxu3 }
  0xc6   : > { %v387_v47 = vpop.f32.mrf.mxu1  ;;  %v428_v48 = vpop.f32.mrf.mxu2 }
  0xc7   : > { %v388_v54 = vadd.f32 %v387_v47, %v361_v51 }
  0xc8   : > { %v489_v52 = vpop.f32.mrf.mxu0 }
  0xc9   : > { %v490_v56 = vadd.f32 %v489_v52, %v460_v53  ;;  %v429_v59 = vadd.f32 %v428_v48, %v388_v54 }
  0xcb   : > { %v464_v63 = vadd.f32 %v463_v46, %v429_v59 }
  0xcc   : > { %v579_v55 = vpop.f32.mrf.mxu3 }
  0xce   : > { %v519_v57 = vpop.f32.mrf.mxu1  ;;  %v552_v58 = vpop.f32.mrf.mxu2 }
  0xcf   : > { %v520_v60 = vadd.f32 %v519_v57, %v490_v56 }
  0xd0   : > { %v494_v62 = vpop.f32.mrf.mxu0 }
  0xd1   : > { %v553_v61 = vadd.f32 %v552_v58, %v520_v60  ;;  %v495_v2 = vadd.f32 %v494_v62, %v464_v63 }
  0xd3   : > { %v580_v0 = vadd.f32 %v579_v55, %v553_v61 }
  0xd4   : > { %v583_v1 = vpop.f32.mrf.mxu3 }
  0xd5   : > { %587 = vst.msk [vmem:[%s1550_s15] sm:$0xff] %vm586_vm5, %v580_v0 }
  0xd6   : > { %v525_v3 = vpop.f32.mrf.mxu1  ;;  %v556_v4 = vpop.f32.mrf.mxu2 }
  0xd7   : > { %v526_v5 = vadd.f32 %v525_v3, %v495_v2 }
  0xd8   : > { %v625_v8 = vpop.f32.mrf.mxu0 }
  0xd9   : > { %v557_v6 = vadd.f32 %v556_v4, %v526_v5 }
  0xdb   : > { %v584_v9 = vadd.f32 %v583_v1, %v557_v6 }
  0xdc   : > { %v724_v10 = vpop.f32.mrf.mxu3 }
  0xdd   : > { %588 = vst.msk [vmem:[%s1550_s15 + $0x8] sm:$0xff] %vm586_vm5, %v584_v9 }
  0xde   : > { %v664_v11 = vpop.f32.mrf.mxu1  ;;  %v694_v12 = vpop.f32.mrf.mxu2 }
  0xdf   : > { %v665_v18 = vadd.f32 %v664_v11, %v625_v8 }
  0xe0   : > { %v633_v14 = vpop.f32.mrf.mxu0 }
  0xe1   : > { %v695_v20 = vadd.f32 %v694_v12, %v665_v18 }
  0xe3   : > { %v725_v23 = vadd.f32 %v724_v10, %v695_v20 }
  0xe4   : > { %v730_v16 = vpop.f32.mrf.mxu3 }
  0xe6   : > { %v668_v17 = vpop.f32.mrf.mxu1  ;;  %v699_v13 = vpop.f32.mrf.mxu2 }
  0xe7   : > { %v669_v26 = vadd.f32 %v668_v17, %v633_v14 }
  0xe8   : > { %v757_v19 = vpop.f32.mrf.mxu0 }
  0xe9   : > { %v758_v27 = vadd.f32 %v757_v19, %v725_v23  ;;  %v700_v7 = vadd.f32 %v699_v13, %v669_v26 }
  0xeb   : > { %v731_v31 = vadd.f32 %v730_v16, %v700_v7 }
  0xec   : > { %v860_v21 = vpop.f32.mrf.mxu3 }
  0xee   : > { %v784_v22 = vpop.f32.mrf.mxu1  ;;  %v821_v24 = vpop.f32.mrf.mxu2 }
  0xef   : > { %v785_v15 = vadd.f32 %v784_v22, %v758_v27 }
  0xf0   : > { %v761_v28 = vpop.f32.mrf.mxu0 }
  0xf1   : > { %v822_v32 = vadd.f32 %v821_v24, %v785_v15  ;;  %v762_v33 = vadd.f32 %v761_v28, %v731_v31 }
  0xf3   : > { %v861_v35 = vadd.f32 %v860_v21, %v822_v32 }
  0xf4   : > { %v864_v25 = vpop.f32.mrf.mxu3 }
  0xf6   : > { %v788_v29 = vpop.f32.mrf.mxu1  ;;  %v829_v30 = vpop.f32.mrf.mxu2 }
  0xf7   : > { %v789_v36 = vadd.f32 %v788_v29, %v762_v33 }
  0xf8   : > { %v890_v34 = vpop.f32.mrf.mxu0 }
  0xf9   : > { %v891_v37 = vadd.f32 %v890_v34, %v861_v35  ;;  %v830_v41 = vadd.f32 %v829_v30, %v789_v36 }
  0xfb   : > { %v865_v45 = vadd.f32 %v864_v25, %v830_v41 }
  0xfc   : > { %v980_v38 = vpop.f32.mrf.mxu3 }
  0xfe   : > { %v920_v39 = vpop.f32.mrf.mxu1  ;;  %v953_v40 = vpop.f32.mrf.mxu2 }
  0xff   : > { %v921_v42 = vadd.f32 %v920_v39, %v891_v37 }
 0x100   : > { %v895_v44 = vpop.f32.mrf.mxu0 }
 0x101   : > { %v954_v43 = vadd.f32 %v953_v40, %v921_v42  ;;  %v896_v47 = vadd.f32 %v895_v44, %v865_v45 }
 0x103   : > { %v981_v46 = vadd.f32 %v980_v38, %v954_v43 }
 0x104   : > { %v984_v51 = vpop.f32.mrf.mxu3 }
 0x105   : > { %989 = vrot.lane.b32.xlu0 %v981_v46, %s1288_s9 }
 0x106   : > { %v926_v48 = vpop.f32.mrf.mxu1  ;;  %v957_v49 = vpop.f32.mrf.mxu2 }
 0x107   : > { %v927_v50 = vadd.f32 %v926_v48, %v896_v47 }
 0x109   : > { %v958_v52 = vadd.f32 %v957_v49, %v927_v50 }
 0x10b   : > { %v985_v53 = vadd.f32 %v984_v51, %v958_v52 }
 0x10d   : > { %991 = vrot.lane.b32.xlu0 %v985_v53, %s1288_s9 }
 0x177   : > { %v990_v54 = vpop.permute.xlu0 %989 }
 0x178   : > { %996 = vst.msk [vmem:[%s1550_s15] sm:$0xff] %vm995_vm6, %v990_v54 }
 0x17f   : > { %v992_v55 = vpop.permute.xlu0 %991 }
 0x180   : > { %997 = vst.msk [vmem:[%s1550_s15 + $0x8] sm:$0xff] %vm995_vm6, %v992_v55 }
 0x181 PF: > { %s14_s11 = sadd.s32 1, %s1282_s11   ;;  %s1586_s6 = smov %s1266_s7 }
 0x182   : > { %p11_p0 = scmp.ge.s32.totalorder %s14_s11, 4   ;;  %s1587_s7 = smov %s1270_s8 }
 0x183   : > { %s1588_s8 = smov %s1348_s18  ;;  %s1589_s9 = smov %s1278_s10 }
 0x184   : > { %s1590_s10 = smov %s1592_s13  ;;  %13 = sbr.rel (!%p11_p0) target bundleno = 4 (0x4), region = 67 }
 0x189   :  { %1028 = vsyncpa [#allocation3], 1 }
 0x18a   :  { %1030 = vsyncpa [#allocation3 + $0x1], 1 }

</bundles_post_ra>
